<compile_context>
chip_gen: v7x
topology: tpu7x:2x2x1
jax: 0.10.0
libtpu: 0.0.40
codegen_flags: <defaults>
</compile_context>

<pallas_src>
import functools

import jax
import jax.numpy as jnp
from jax.experimental import pallas as pl
from jax.experimental.pallas import tpu as pltpu


def _round_up(a, b):
    return (a + b - 1) // b * b


def _linear_kernel_packed(x_ref, w_ref, b_ref, o_ref):
    # x:(TM/p, p*K)  w:(p*K, p*N) block-diag  b:(1, p*N)  o:(TM/p, p*N)
    acc = jax.lax.dot_general(
        x_ref[...], w_ref[...],
        dimension_numbers=(((1,), (0,)), ((), ())),
        preferred_element_type=jnp.float32)
    o_ref[...] = (acc + b_ref[...]).astype(o_ref.dtype)


def _linear_kernel_nt(x_ref, w_ref, b_ref, o_ref):
    # x:(TM, K)  w:(N, K)  contract on K in-kernel (no wrapper transpose).
    acc = jax.lax.dot_general(
        x_ref[...], w_ref[...],
        dimension_numbers=(((1,), (1,)), ((), ())),
        preferred_element_type=jnp.float32)
    o_ref[...] = (acc + b_ref[...]).astype(o_ref.dtype)


def entity_enhancement(x, weight, bias, *, tm=512):
    """x: (..., 2*hidden); weight: (hidden, 2*hidden); bias: (hidden,)."""
    *lead, k = x.shape
    n, k_w = weight.shape
    assert k_w == k, (k_w, k)

    m = 1
    for d in lead:
        m *= d
    x_flat = x.reshape(m, k)

    # Lane-packing factor: fold p rows into one 128-wide output row when the
    # output feature dim is narrower than a vreg lane row.
    p = 128 // n if (n < 128 and 128 % n == 0) else 1

    # Row tile in *original* rows: multiple of 8*p, shrunk for tiny problems.
    quantum = 8 * p
    tm = min(tm, _round_up(m, quantum))
    tm = _round_up(tm, quantum)
    m_pad = _round_up(m, tm)

    if m_pad != m:
        x_flat = jnp.pad(x_flat, ((0, m_pad - m), (0, 0)))

    if p > 1:
        # (M, K) -> (M/p, p*K) is a row-major bitcast; block-diag weight makes
        # each 128-wide output row hold p consecutive logical output rows.
        x_in = x_flat.reshape(m_pad // p, p * k)
        w_in = jnp.kron(jnp.eye(p, dtype=weight.dtype), weight.T)  # (p*K, p*N)
        b_in = jnp.tile(bias, p).reshape(1, p * n)
        kernel = _linear_kernel_packed
        bm, bk, bn = tm // p, p * k, p * n
        out_rows = m_pad // p
    else:
        x_in = x_flat
        w_in = weight                       # (N, K) — no transpose pass
        b_in = bias.reshape(1, n)
        kernel = _linear_kernel_nt
        bm, bk, bn = tm, k, n
        out_rows = m_pad

    grid = (m_pad // tm,)
    itemsize = jnp.dtype(x.dtype).itemsize
    cost = pl.CostEstimate(
        flops=2 * m * k * n,
        bytes_accessed=(m * k + k * n + m * n + n) * itemsize,
        transcendentals=0,
    )

    y_pack = pl.pallas_call(
        kernel,
        out_shape=jax.ShapeDtypeStruct((out_rows, bn), x.dtype),
        grid=grid,
        in_specs=[
            pl.BlockSpec((bm, bk), lambda i: (i, 0)),          # x tiles over M
            pl.BlockSpec(w_in.shape, lambda i: (0, 0)),        # resident weight
            pl.BlockSpec((1, bn), lambda i: (0, 0)),           # resident bias
        ],
        out_specs=pl.BlockSpec((bm, bn), lambda i: (i, 0)),
        compiler_params=pltpu.CompilerParams(
            # Rows are independent -> parallel (shards across v7x's 2 TCs).
            dimension_semantics=("parallel",),
        ),
        cost_estimate=cost,
    )(x_in, w_in, b_in)

    y_flat = y_pack.reshape(m_pad, n)[:m]
    return y_flat.reshape(*lead, n)


if __name__ == "__main__":
    hidden_size = 32
    entity_in_dim = 2 * hidden_size     # 64
    batch, seq = 2, 8

    key = jax.random.PRNGKey(0)
    kx, kw, kb = jax.random.split(key, 3)

    # Deterministic synthetic parameters (nn.Linear-style uniform init).
    bound = 1.0 / (entity_in_dim ** 0.5)
    weight = jax.random.uniform(
        kw, (hidden_size, entity_in_dim), jnp.float32, -bound, bound)
    bias = jax.random.uniform(
        kb, (hidden_size,), jnp.float32, -bound, bound)

    x = jax.random.normal(kx, (batch, seq, entity_in_dim), jnp.float32)

    fwd = jax.jit(functools.partial(entity_enhancement))
    y = fwd(x, weight, bias)
    y = jax.block_until_ready(y)

    # sanity check vs plain-JAX reference
    y_ref = x @ weight.T + bias
    assert y.shape == (batch, seq, hidden_size)
    assert jnp.allclose(y, y_ref, atol=1e-4, rtol=1e-4)

    print("KERNEL_OK")
</pallas_src>

<mosaic_0001>
module attributes {stable_mosaic.version = 11 : i64} {
  func.func @_linear_kernel_packed(%arg0: i32, %arg1: memref<8x256xf32, #tpu.memory_space<vmem>>, %arg2: memref<256x128xf32, #tpu.memory_space<vmem>>, %arg3: memref<1x128xf32, #tpu.memory_space<vmem>>, %arg4: memref<8x128xf32, #tpu.memory_space<vmem>>) attributes {dimension_semantics = [#tpu.dimension_semantics<parallel>], iteration_bounds = array<i64: 1>, scalar_prefetch = 0 : i64, scratch_operands = 0 : i64, tpu.core_type = #tpu.core_type<tc>, window_params = [{transform_indices = @transform_0, window_bounds = array<i64: 8, 256>}, {pipeline_mode = #tpu.pipeline_mode<synchronous>, transform_indices = @transform_1, window_bounds = array<i64: 256, 128>}, {pipeline_mode = #tpu.pipeline_mode<synchronous>, transform_indices = @transform_2, window_bounds = array<i64: 1, 128>}, {transform_indices = @transform_3, window_bounds = array<i64: 8, 128>}]} {
    %c0 = arith.constant 0 : index
    %c0_0 = arith.constant 0 : index
    %0 = vector.load %arg1[%c0, %c0_0] : memref<8x256xf32, #tpu.memory_space<vmem>>, vector<8x256xf32>
    %c0_1 = arith.constant 0 : index
    %c0_2 = arith.constant 0 : index
    %1 = vector.load %arg2[%c0_1, %c0_2] : memref<256x128xf32, #tpu.memory_space<vmem>>, vector<256x128xf32>
    %cst = arith.constant dense<0.000000e+00> : vector<8x128xf32>
    %2 = tpu.matmul %0, %1, %cst {dimension_numbers = #tpu.dot_dimension_numbers<[1], [0], [0], [1], [0, 0, 1, 1], [], []>} : vector<8x256xf32>, vector<256x128xf32>, vector<8x128xf32> -> vector<8x128xf32>
    %c0_3 = arith.constant 0 : index
    %c0_4 = arith.constant 0 : index
    %3 = vector.load %arg3[%c0_3, %c0_4] : memref<1x128xf32, #tpu.memory_space<vmem>>, vector<1x128xf32>
    %4 = vector.broadcast %3 : vector<1x128xf32> to vector<8x128xf32>
    %5 = arith.addf %2, %4 : vector<8x128xf32>
    %c0_5 = arith.constant 0 : index
    %c0_6 = arith.constant 0 : index
    %6 = vector.load %arg4[%c0_5, %c0_6] : memref<8x128xf32, #tpu.memory_space<vmem>>, vector<8x128xf32>
    tpu.vector_store %arg4[%c0_5, %c0_6], %5 {strides = array<i32>} : memref<8x128xf32, #tpu.memory_space<vmem>>, vector<8x128xf32>,
    return
  }
  func.func @transform_0(%arg0: i32) -> (i32, i32) {
    %c0_i32 = arith.constant 0 : i32
    %c0_i32_0 = arith.constant 0 : i32
    return %arg0, %c0_i32 : i32, i32
  }
  func.func @transform_1(%arg0: i32) -> (i32, i32) {
    %c0_i32 = arith.constant 0 : i32
    %c0_i32_0 = arith.constant 0 : i32
    %c0_i32_1 = arith.constant 0 : i32
    return %c0_i32, %c0_i32_0 : i32, i32
  }
  func.func @transform_2(%arg0: i32) -> (i32, i32) {
    %c0_i32 = arith.constant 0 : i32
    %c0_i32_0 = arith.constant 0 : i32
    %c0_i32_1 = arith.constant 0 : i32
    return %c0_i32, %c0_i32_0 : i32, i32
  }
  func.func @transform_3(%arg0: i32) -> (i32, i32) {
    %c0_i32 = arith.constant 0 : i32
    %c0_i32_0 = arith.constant 0 : i32
    return %arg0, %c0_i32 : i32, i32
  }
}

</mosaic_0001>

<bundles_post_ra>
// kernel: tile.8
= control target key start
LH: loop header
LB: loop body
LE: loop exit
PB: predicated region body
PF: predicated region fallthrough
CT: control target
= control target key end

     0   :  { %s22_s0 = inlined_call_operand.vmem [shape: f32[32], index: 0, kind: input, shape index: {}]   ;;  %s23_s1 = inlined_call_operand.vmem [shape: f32[4,32], index: 1, kind: output, shape index: {}]  }
   0x1   :  { %v4_v0 = vld [vmem:[%s22_s0] ss:$0 sm:$0xff] }
   0x2   :  { %5 = vst [vmem:[%s23_s1] sm:$0xf] %v4_v0 }

// kernel: tile.9
= control target key start
LH: loop header
LB: loop body
LE: loop exit
PB: predicated region body
PF: predicated region fallthrough
CT: control target
= control target key end

     0   :  { %vm7_vm0 = vcmask 261120   ;;  %s37_s8 = smov 32   ;;  %s38_s9 = smov 64   ;;  %vm13_vm1 = vcmask 1048320   ;;  %vm19_vm2 = vcmask 785920   ;;  %vm25_vm3 = vcmask 523520   ;;  %s55_s0 = inlined_call_operand.vmem [shape: f32[4,32], index: 0, kind: input, shape index: {}]   ;;  %s56_s1 = inlined_call_operand.vmem [shape: f32[1,128], index: 1, kind: output, shape index: {}]  }
   0x1   :  { %v4_v0 = vld [vmem:[%s55_s0] sm:$0xf]  ;;  %s36_s0 = smov 96  }
   0x2   :  { %5 = vst [vmem:[#allocation1] sm:$0xf] %v4_v0 }
   0x9   :  { %v10_v1 = vld [vmem:[#allocation1 + $0x3] sm:$0x1]   ;;  %v22_v2 = vld [vmem:[#allocation1 + $0x1] sm:$0x1]   ;;  %v6_v3 = vld [vmem:[#allocation1] sm:$0x1]  }
   0xa   :  { %11 = vrot.lane.b32.xlu0 %v10_v1, %s36_s0  ;;  %23 = vrot.lane.b32.xlu1 %v22_v2, %s37_s8  ;;  %v16_v4 = vld [vmem:[#allocation1 + $0x2] sm:$0x1]   ;;  %8 = vst.msk [vmem:[#allocation0] sm:$0x1] %vm7_vm0, %v6_v3  }
   0xe   :  { %17 = vrot.lane.b32.xlu0 %v16_v4, %s38_s9 }
  0x7c   :  { %v12_v5 = vpop.permute.xlu0 %11   ;;  %v24_v6 = vpop.permute.xlu1 %23  }
  0x7d   :  { %14 = vst.msk [vmem:[#allocation0] sm:$0x1] %vm13_vm1, %v12_v5  }
  0x80   :  { %v18_v7 = vpop.permute.xlu0 %17  }
  0x81   :  { %20 = vst.msk [vmem:[#allocation0] sm:$0x1] %vm19_vm2, %v18_v7  }
  0x82   :  { %26 = vst.msk [vmem:[#allocation0] sm:$0x1] %vm25_vm3, %v24_v6  }
  0x89   :  { %v30_v8 = vld [vmem:[#allocation0] sm:$0x1] }
  0x8a   :  { %32 = vst [vmem:[%s56_s1] sm:$0x1] %v30_v8 }

// kernel: entity_enhancement.1
= control target key start
LH: loop header
LB: loop body
LE: loop exit
PB: predicated region body
PF: predicated region fallthrough
CT: control target
= control target key end

     0   :  { %s326_s1 = inlined_call_operand.vmem [shape: f32[256,128], index: 1, kind: input, shape index: {}]   ;;  %s327_s0 = inlined_call_operand.vmem [shape: f32[8,256], index: 0, kind: input, shape index: {}]   ;;  %s328_s2 = inlined_call_operand.vmem [shape: f32[1,128], index: 2, kind: input, shape index: {}]   ;;  %s329_s3 = inlined_call_operand.vmem [shape: f32[8,128], index: 3, kind: output, shape index: {}]  }
   0x1   :  { %v32_v0 = vld [vmem:[%s326_s1 + $0x80] sm:$0xff]  ;;  %v33_v1 = vld [vmem:[%s326_s1 + $0x88] sm:$0xff]  ;;  %v34_v5 = vld [vmem:[%s326_s1 + $0x90] sm:$0xff] }
   0x2   :  { %v16_v2 = vld [vmem:[%s326_s1] sm:$0xff]  ;;  %v166_v3 = vpack.c.bf16 %v33_v1, %v32_v0  ;;  %v17_v4 = vld [vmem:[%s326_s1 + $0x8] sm:$0xff]  ;;  %v35_v6 = vld [vmem:[%s326_s1 + $0x98] sm:$0xff] }
   0x3   :  { %v168_v7 = vpack.c.bf16 %v17_v4, %v16_v2  ;;  %v170_v8 = vpack.c.bf16 %v35_v6, %v34_v5  ;;  %v18_v9 = vld [vmem:[%s326_s1 + $0x10] sm:$0xff]  ;;  %v19_v10 = vld [vmem:[%s326_s1 + $0x18] sm:$0xff]  ;;  %v36_v11 = vld [vmem:[%s326_s1 + $0xa0] sm:$0xff] }
   0x4   :  { %167 = vmatprep.subr.bf16.mxu0 %v166_v3  ;;  %v37_v12 = vld [vmem:[%s326_s1 + $0xa8] sm:$0xff]  ;;  %v172_v13 = vpack.c.bf16 %v19_v10, %v18_v9  ;;  %v20_v15 = vld [vmem:[%s326_s1 + $0x20] sm:$0xff]  ;;  %v38_v17 = vld [vmem:[%s326_s1 + $0xb0] sm:$0xff] }
   0x5   :  { %169 = vmatpush3.bf16.msra.mxu0 %v168_v7  ;;  %v174_v14 = vpack.c.bf16 %v37_v12, %v36_v11  ;;  %v21_v16 = vld [vmem:[%s326_s1 + $0x28] sm:$0xff]  ;;  %v39_v18 = vld [vmem:[%s326_s1 + $0xb8] sm:$0xff]  ;;  %v22_v21 = vld [vmem:[%s326_s1 + $0x30] sm:$0xff] }
   0x6   :  { %171 = vmatprep.subr.bf16.mxu0 %v170_v8  ;;  %v176_v19 = vpack.c.bf16 %v21_v16, %v20_v15  ;;  %v178_v20 = vpack.c.bf16 %v39_v18, %v38_v17  ;;  %v23_v22 = vld [vmem:[%s326_s1 + $0x38] sm:$0xff]  ;;  %v40_v23 = vld [vmem:[%s326_s1 + $0xc0] sm:$0xff]  ;;  %v41_v24 = vld [vmem:[%s326_s1 + $0xc8] sm:$0xff] }
   0x7   :  { %v15_v25 = vld [vmem:[%s327_s0 + $0x8] sm:$0xff]  ;;  %v180_v26 = vpack.c.bf16 %v23_v22, %v22_v21  ;;  %v182_v27 = vpack.c.bf16 %v41_v24, %v40_v23  ;;  %v24_v28 = vld [vmem:[%s326_s1 + $0x40] sm:$0xff]  ;;  %v42_v30 = vld [vmem:[%s326_s1 + $0xd0] sm:$0xff] }
   0x8   :  { %119 = vmatprep.mubr.f32.mxu0 %v15_v25  ;;  %v25_v29 = vld [vmem:[%s326_s1 + $0x48] sm:$0xff]  ;;  %v43_v31 = vld [vmem:[%s326_s1 + $0xd8] sm:$0xff]  ;;  %v26_v34 = vld [vmem:[%s326_s1 + $0x50] sm:$0xff] }
   0x9   :  { %173 = vmatpush3.bf16.msra.mxu0 %v172_v13  ;;  %v184_v32 = vpack.c.bf16 %v25_v29, %v24_v28  ;;  %v186_v33 = vpack.c.bf16 %v43_v31, %v42_v30  ;;  %v27_v35 = vld [vmem:[%s326_s1 + $0x58] sm:$0xff]  ;;  %v44_v36 = vld [vmem:[%s326_s1 + $0xe0] sm:$0xff]  ;;  %v45_v37 = vld [vmem:[%s326_s1 + $0xe8] sm:$0xff] }
   0xa   :  { %175 = vmatprep.subr.bf16.mxu0 %v174_v14  ;;  %v188_v38 = vpack.c.bf16 %v27_v35, %v26_v34  ;;  %v190_v39 = vpack.c.bf16 %v45_v37, %v44_v36  ;;  %v28_v40 = vld [vmem:[%s326_s1 + $0x60] sm:$0xff]  ;;  %v29_v41 = vld [vmem:[%s326_s1 + $0x68] sm:$0xff]  ;;  %v46_v42 = vld [vmem:[%s326_s1 + $0xf0] sm:$0xff] }
   0xb   :  { %v47_v43 = vld [vmem:[%s326_s1 + $0xf8] sm:$0xff]  ;;  %v192_v44 = vpack.c.bf16 %v29_v41, %v28_v40  ;;  %v30_v46 = vld [vmem:[%s326_s1 + $0x70] sm:$0xff]  ;;  %v14_v49 = vld [vmem:[%s327_s0] sm:$0xff] }
   0xc   :  { %v194_v45 = vpack.c.bf16 %v47_v43, %v46_v42  ;;  %v31_v47 = vld [vmem:[%s326_s1 + $0x78] sm:$0xff]  ;;  %v130_v51 = vld [vmem:[%s328_s2] ss:$0 sm:$0xff] }
   0xd   :  { %177 = vmatpush3.bf16.msra.mxu0 %v176_v19  ;;  %v196_v48 = vpack.c.bf16 %v31_v47, %v30_v46 }
   0xe   :  { %179 = vmatprep.subr.bf16.mxu0 %v178_v20 }
  0x11   :  { %181 = vmatpush3.bf16.msra.mxu0 %v180_v26 }
  0x12   :  { %183 = vmatprep.subr.bf16.mxu0 %v182_v27 }
  0x15   :  { %185 = vmatpush3.bf16.msra.mxu0 %v184_v32 }
  0x16   :  { %187 = vmatprep.subr.bf16.mxu0 %v186_v33 }
  0x19   :  { %189 = vmatpush3.bf16.msra.mxu0 %v188_v38 }
  0x1a   :  { %191 = vmatprep.subr.bf16.mxu0 %v190_v39 }
  0x1d   :  { %193 = vmatpush3.bf16.msra.mxu0 %v192_v44 }
  0x1e   :  { %195 = vmatprep.subr.bf16.mxu0 %v194_v45 }
  0x21   :  { %197 = vmatpush3.bf16.msra.mxu0 %v196_v48 }
  0x24   :  { %120 = vmatmul.mubr.f32.vlgmr.msra.gmra.mrb[0].mxu0 %v14_v49 }
  0xf7   :  { %v163_v50 = vpop.f32.mrb[0].mxu0 }
  0xf8   :  { %v164_v52 = vpop.f32.mrb[1].mxu0 }
  0xf9   :  { %v165_v53 = vadd.f32 %v164_v52, %v163_v50 }
  0xfb   :  { %v122_v54 = vadd.f32 %v165_v53, %v130_v51 }
  0xfd   :  { %125 = vst [vmem:[%s329_s3] sm:$0xff] %v122_v54 }

</bundles_post_ra>
